<compile_context>
chip_gen: v7x
topology: tpu7x:2x2x1
jax: 0.10.0
libtpu: 0.0.40
codegen_flags: <defaults>
</compile_context>

<pallas_src>
import jax
import jax.numpy as jnp
from jax import lax
from jax.experimental import pallas as pl
from jax.experimental.pallas import tpu as pltpu

HDIM = 128
IN_DIM = 85
EPS = 1e-5

# dot_general dims for A @ B^T (contract last dim of both operands).
TRANS_B_DIMS = (((1,), (1,)), ((), ()))


def _round_up(n, m):
    return ((n + m - 1) // m) * m


def _elu(x):
    # ELU(alpha=1.0): x if x > 0 else exp(x) - 1
    return jnp.where(x > 0, x, jnp.exp(x) - 1.0)


def dnn_kernel(x_ref, w1_ref, b1_ref, w2_ref, b2_ref, w3_ref, b3_ref, o_ref):
    # x streamed from HBM as f32 (single HBM pass); bf16 cast on the VPU.
    x = x_ref[...].astype(jnp.bfloat16)                      # (TILE, 85)

    # fc1 (+ folded bn1) + ELU -- bf16 MXU inputs, f32 accumulation.
    h1 = jnp.dot(x, w1_ref[...],
                 preferred_element_type=jnp.float32) + b1_ref[...]
    h1 = _elu(h1)

    # fc2 (+ folded bn2) + ELU
    h2 = jnp.dot(h1.astype(jnp.bfloat16), w2_ref[...],
                 preferred_element_type=jnp.float32) + b2_ref[...]
    h2 = _elu(h2)

    # fc3: contract w3 row (1,128) against h2 (TILE,128) on the feature axis,
    # giving a lane-dense (1, TILE) result (unmasked 128-wide stores, tiny
    # output VMEM buffer).
    y_row = lax.dot_general(w3_ref[...], h2.astype(jnp.bfloat16),
                            dimension_numbers=TRANS_B_DIMS,
                            preferred_element_type=jnp.float32)  # (1, TILE)
    o_ref[...] = y_row + b3_ref[...]


def init_params(key):
    """Deterministic synthetic parameters (shapes match the PyTorch module)."""
    ks = jax.random.split(key, 6)

    def linear_init(kw, kb, fan_in, fan_out):
        bound = 1.0 / jnp.sqrt(fan_in)
        w = jax.random.uniform(kw, (fan_out, fan_in), jnp.float32, -bound, bound)
        b = jax.random.uniform(kb, (fan_out,), jnp.float32, -bound, bound)
        return w, b

    w1, b1 = linear_init(ks[0], ks[1], IN_DIM, HDIM)   # (128, 85), (128,)
    w2, b2 = linear_init(ks[2], ks[3], HDIM, HDIM)     # (128, 128), (128,)
    w3, b3 = linear_init(ks[4], ks[5], HDIM, 1)        # (1, 128), (1,)

    # BatchNorm1d params at init: gamma=1, beta=0, running_mean=0, running_var=1
    bn = {
        "g1": jnp.ones((HDIM,), jnp.float32), "be1": jnp.zeros((HDIM,), jnp.float32),
        "m1": jnp.zeros((HDIM,), jnp.float32), "v1": jnp.ones((HDIM,), jnp.float32),
        "g2": jnp.ones((HDIM,), jnp.float32), "be2": jnp.zeros((HDIM,), jnp.float32),
        "m2": jnp.zeros((HDIM,), jnp.float32), "v2": jnp.ones((HDIM,), jnp.float32),
    }
    return {"w1": w1, "b1": b1, "w2": w2, "b2": b2, "w3": w3, "b3": b3, **bn}


def _fold_bn(w, b, gamma, beta, mean, var):
    """Fold eval-mode BatchNorm into the preceding Linear.

    y = ((x @ w.T + b) - mean) * gamma / sqrt(var + eps) + beta
      =  x @ (w.T * s) + ((b - mean) * s + beta),   s = gamma / sqrt(var + eps)
    Returns (w_folded (in, out), b_folded (out,)).
    """
    s = gamma / jnp.sqrt(var + EPS)
    return w.T * s, (b - mean) * s + beta


def dnn_forward(x, p, tile=4096):
    n = x.shape[0]
    # Tile is a multiple of 128 (lane-dense output block), clamped so a tiny
    # batch does not allocate a huge block; ragged last block handles the rest.
    tile = max(128, min(_round_up(tile, 128), _round_up(n, 128)))
    grid = pl.cdiv(n, tile)

    # Fold BN (eval mode) into the linear weights/biases (glue, plain JAX;
    # parameter tensors are tiny).
    w1f, b1f = _fold_bn(p["w1"], p["b1"], p["g1"], p["be1"], p["m1"], p["v1"])
    w2f, b2f = _fold_bn(p["w2"], p["b2"], p["g2"], p["be2"], p["m2"], p["v2"])

    args = (
        x,                                                     # (n, 85) f32, no wrapper cast / pad
        w1f.astype(jnp.bfloat16), b1f.reshape(1, HDIM),        # (85,128) bf16, (1,128) f32
        w2f.astype(jnp.bfloat16), b2f.reshape(1, HDIM),        # (128,128) bf16, (1,128) f32
        p["w3"].astype(jnp.bfloat16), p["b3"].reshape(1, 1),   # (1,128) bf16 row, (1,1) f32
    )

    const = lambda i: (0, 0)   # weights/biases resident in VMEM across the grid
    in_specs = [
        pl.BlockSpec((tile, IN_DIM), lambda i: (i, 0)),
        pl.BlockSpec((IN_DIM, HDIM), const), pl.BlockSpec((1, HDIM), const),
        pl.BlockSpec((HDIM, HDIM), const),   pl.BlockSpec((1, HDIM), const),
        pl.BlockSpec((1, HDIM), const),      pl.BlockSpec((1, 1), const),
    ]

    param_elems = IN_DIM * HDIM + HDIM * HDIM + HDIM + 4 * HDIM + 1
    cost = pl.CostEstimate(
        flops=2 * n * (IN_DIM * HDIM + HDIM * HDIM + HDIM),
        transcendentals=2 * n * HDIM,                       # exp in the two ELUs
        bytes_accessed=n * IN_DIM * 4 + n * 4 + param_elems * 4,
    )

    y_row = pl.pallas_call(
        dnn_kernel,
        out_shape=jax.ShapeDtypeStruct((1, n), jnp.float32),   # lane-dense output
        grid=(grid,),
        in_specs=in_specs,
        out_specs=pl.BlockSpec((1, tile), lambda i: (0, i)),
        compiler_params=pltpu.CompilerParams(
            dimension_semantics=("parallel",)),
        cost_estimate=cost,
    )(*args)
    return y_row.reshape(n, 1)


def dnn_reference_bf16(x, p):
    """Pure-JAX reference mirroring the kernel's precision treatment
    (bf16 matmul inputs, f32 accumulation, f32 elementwise)."""
    w1f, b1f = _fold_bn(p["w1"], p["b1"], p["g1"], p["be1"], p["m1"], p["v1"])
    w2f, b2f = _fold_bn(p["w2"], p["b2"], p["g2"], p["be2"], p["m2"], p["v2"])
    h1 = jnp.dot(x.astype(jnp.bfloat16), w1f.astype(jnp.bfloat16),
                 preferred_element_type=jnp.float32) + b1f
    h1 = _elu(h1)
    h2 = jnp.dot(h1.astype(jnp.bfloat16), w2f.astype(jnp.bfloat16),
                 preferred_element_type=jnp.float32) + b2f
    h2 = _elu(h2)
    return jnp.dot(h2.astype(jnp.bfloat16), p["w3"].T.astype(jnp.bfloat16),
                   preferred_element_type=jnp.float32) + p["b3"]


def dnn_reference_f32(x, p):
    """Pure-JAX f32 reference (eval-mode PyTorch semantics)."""
    s1 = p["g1"] / jnp.sqrt(p["v1"] + EPS)
    t1 = p["be1"] - p["m1"] * s1
    s2 = p["g2"] / jnp.sqrt(p["v2"] + EPS)
    t2 = p["be2"] - p["m2"] * s2
    h1 = x @ p["w1"].T + p["b1"]
    h1 = _elu(h1 * s1 + t1)
    h2 = h1 @ p["w2"].T + p["b2"]
    h2 = _elu(h2 * s2 + t2)
    return h2 @ p["w3"].T + p["b3"]


if __name__ == "__main__":
    key = jax.random.PRNGKey(0)
    k_x, k_x2, k_p = jax.random.split(key, 3)
    params = init_params(k_p)

    # Small case: single (ragged) grid step, block larger than the batch.
    batch = 8
    x = jax.random.normal(k_x, (batch, IN_DIM), jnp.float32)
    y = jax.block_until_ready(dnn_forward(x, params))
    assert y.shape == (batch, 1)
    assert jnp.allclose(y, dnn_reference_bf16(x, params), atol=1e-2, rtol=1e-2)
    assert jnp.allclose(y, dnn_reference_f32(x, params), atol=5e-2, rtol=5e-2)

    # Multi-tile + ragged last block (exercises grid, clipping, resident weights).
    batch2 = 300
    x2 = jax.random.normal(k_x2, (batch2, IN_DIM), jnp.float32)
    y2 = jax.block_until_ready(dnn_forward(x2, params, tile=128))
    assert y2.shape == (batch2, 1)
    assert jnp.allclose(y2, dnn_reference_bf16(x2, params), atol=1e-2, rtol=1e-2)
    assert jnp.allclose(y2, dnn_reference_f32(x2, params), atol=5e-2, rtol=5e-2)

    print("KERNEL_OK")
</pallas_src>

<mosaic_0001>
module attributes {stable_mosaic.version = 11 : i64} {
  func.func @dnn_kernel(%arg0: i32, %arg1: memref<128x85xf32, #tpu.memory_space<vmem>>, %arg2: memref<85x128xbf16, #tpu.memory_space<vmem>>, %arg3: memref<1x128xf32, #tpu.memory_space<vmem>>, %arg4: memref<128x128xbf16, #tpu.memory_space<vmem>>, %arg5: memref<1x128xf32, #tpu.memory_space<vmem>>, %arg6: memref<1x128xbf16, #tpu.memory_space<vmem>>, %arg7: memref<1x1xf32, #tpu.memory_space<vmem>>, %arg8: memref<1x128xf32, #tpu.memory_space<vmem>>) attributes {dimension_semantics = [#tpu.dimension_semantics<parallel>], iteration_bounds = array<i64: 1>, scalar_prefetch = 0 : i64, scratch_operands = 0 : i64, tpu.core_type = #tpu.core_type<tc>, window_params = [{transform_indices = @transform_0, window_bounds = array<i64: 128, 85>}, {pipeline_mode = #tpu.pipeline_mode<synchronous>, transform_indices = @transform_1, window_bounds = array<i64: 85, 128>}, {pipeline_mode = #tpu.pipeline_mode<synchronous>, transform_indices = @transform_2, window_bounds = array<i64: 1, 128>}, {pipeline_mode = #tpu.pipeline_mode<synchronous>, transform_indices = @transform_3, window_bounds = array<i64: 128, 128>}, {pipeline_mode = #tpu.pipeline_mode<synchronous>, transform_indices = @transform_4, window_bounds = array<i64: 1, 128>}, {pipeline_mode = #tpu.pipeline_mode<synchronous>, transform_indices = @transform_5, window_bounds = array<i64: 1, 128>}, {pipeline_mode = #tpu.pipeline_mode<synchronous>, transform_indices = @transform_6, window_bounds = array<i64: 1, 1>}, {transform_indices = @transform_7, window_bounds = array<i64: 1, 128>}]} {
    %c0 = arith.constant 0 : index
    %c0_0 = arith.constant 0 : index
    %0 = vector.load %arg1[%c0, %c0_0] : memref<128x85xf32, #tpu.memory_space<vmem>>, vector<128x85xf32>
    %1 = arith.truncf %0 : vector<128x85xf32> to vector<128x85xbf16>
    %c0_1 = arith.constant 0 : index
    %c0_2 = arith.constant 0 : index
    %2 = vector.load %arg2[%c0_1, %c0_2] : memref<85x128xbf16, #tpu.memory_space<vmem>>, vector<85x128xbf16>
    %cst = arith.constant dense<0.000000e+00> : vector<128x128xf32>
    %3 = tpu.matmul %1, %2, %cst {dimension_numbers = #tpu.dot_dimension_numbers<[1], [0], [0], [1], [0, 0, 1, 1], [], []>} : vector<128x85xbf16>, vector<85x128xbf16>, vector<128x128xf32> -> vector<128x128xf32>
    %c0_3 = arith.constant 0 : index
    %c0_4 = arith.constant 0 : index
    %4 = vector.load %arg3[%c0_3, %c0_4] : memref<1x128xf32, #tpu.memory_space<vmem>>, vector<1x128xf32>
    %5 = vector.broadcast %4 : vector<1x128xf32> to vector<128x128xf32>
    %6 = arith.addf %3, %5 : vector<128x128xf32>
    %cst_5 = arith.constant 0.000000e+00 : f32
    %7 = vector.broadcast %cst_5 : f32 to vector<128x128xf32>
    %8 = arith.cmpf ogt, %6, %7 : vector<128x128xf32>
    %9 = math.exp %6 : vector<128x128xf32>
    %cst_6 = arith.constant 1.000000e+00 : f32
    %10 = vector.broadcast %cst_6 : f32 to vector<128x128xf32>
    %11 = arith.subf %9, %10 : vector<128x128xf32>
    %12 = arith.select %8, %6, %11 : vector<128x128xi1>, vector<128x128xf32>
    %13 = arith.truncf %12 : vector<128x128xf32> to vector<128x128xbf16>
    %c0_7 = arith.constant 0 : index
    %c0_8 = arith.constant 0 : index
    %14 = vector.load %arg4[%c0_7, %c0_8] : memref<128x128xbf16, #tpu.memory_space<vmem>>, vector<128x128xbf16>
    %cst_9 = arith.constant dense<0.000000e+00> : vector<128x128xf32>
    %15 = tpu.matmul %13, %14, %cst_9 {dimension_numbers = #tpu.dot_dimension_numbers<[1], [0], [0], [1], [0, 0, 1, 1], [], []>} : vector<128x128xbf16>, vector<128x128xbf16>, vector<128x128xf32> -> vector<128x128xf32>
    %c0_10 = arith.constant 0 : index
    %c0_11 = arith.constant 0 : index
    %16 = vector.load %arg5[%c0_10, %c0_11] : memref<1x128xf32, #tpu.memory_space<vmem>>, vector<1x128xf32>
    %17 = vector.broadcast %16 : vector<1x128xf32> to vector<128x128xf32>
    %18 = arith.addf %15, %17 : vector<128x128xf32>
    %cst_12 = arith.constant 0.000000e+00 : f32
    %19 = vector.broadcast %cst_12 : f32 to vector<128x128xf32>
    %20 = arith.cmpf ogt, %18, %19 : vector<128x128xf32>
    %21 = math.exp %18 : vector<128x128xf32>
    %cst_13 = arith.constant 1.000000e+00 : f32
    %22 = vector.broadcast %cst_13 : f32 to vector<128x128xf32>
    %23 = arith.subf %21, %22 : vector<128x128xf32>
    %24 = arith.select %20, %18, %23 : vector<128x128xi1>, vector<128x128xf32>
    %c0_14 = arith.constant 0 : index
    %c0_15 = arith.constant 0 : index
    %25 = vector.load %arg6[%c0_14, %c0_15] : memref<1x128xbf16, #tpu.memory_space<vmem>>, vector<1x128xbf16>
    %26 = arith.truncf %24 : vector<128x128xf32> to vector<128x128xbf16>
    %cst_16 = arith.constant dense<0.000000e+00> : vector<1x128xf32>
    %27 = tpu.matmul %25, %26, %cst_16 {dimension_numbers = #tpu.dot_dimension_numbers<[1], [1], [0], [0], [0, 0, 1, 0], [], []>} : vector<1x128xbf16>, vector<128x128xbf16>, vector<1x128xf32> -> vector<1x128xf32>
    %c0_17 = arith.constant 0 : index
    %c0_18 = arith.constant 0 : index
    %28 = vector.load %arg7[%c0_17, %c0_18] : memref<1x1xf32, #tpu.memory_space<vmem>>, vector<1x1xf32>
    %29 = vector.broadcast %28 : vector<1x1xf32> to vector<1x128xf32>
    %30 = arith.addf %27, %29 : vector<1x128xf32>
    %c0_19 = arith.constant 0 : index
    %c0_20 = arith.constant 0 : index
    %31 = vector.load %arg8[%c0_19, %c0_20] : memref<1x128xf32, #tpu.memory_space<vmem>>, vector<1x128xf32>
    tpu.vector_store %arg8[%c0_19, %c0_20], %30 {strides = array<i32>} : memref<1x128xf32, #tpu.memory_space<vmem>>, vector<1x128xf32>,
    return
  }
  func.func @transform_0(%arg0: i32) -> (i32, i32) {
    %c0_i32 = arith.constant 0 : i32
    %c0_i32_0 = arith.constant 0 : i32
    return %arg0, %c0_i32 : i32, i32
  }
  func.func @transform_1(%arg0: i32) -> (i32, i32) {
    %c0_i32 = arith.constant 0 : i32
    %c0_i32_0 = arith.constant 0 : i32
    %c0_i32_1 = arith.constant 0 : i32
    return %c0_i32, %c0_i32_0 : i32, i32
  }
  func.func @transform_2(%arg0: i32) -> (i32, i32) {
    %c0_i32 = arith.constant 0 : i32
    %c0_i32_0 = arith.constant 0 : i32
    %c0_i32_1 = arith.constant 0 : i32
    return %c0_i32, %c0_i32_0 : i32, i32
  }
  func.func @transform_3(%arg0: i32) -> (i32, i32) {
    %c0_i32 = arith.constant 0 : i32
    %c0_i32_0 = arith.constant 0 : i32
    %c0_i32_1 = arith.constant 0 : i32
    return %c0_i32, %c0_i32_0 : i32, i32
  }
  func.func @transform_4(%arg0: i32) -> (i32, i32) {
    %c0_i32 = arith.constant 0 : i32
    %c0_i32_0 = arith.constant 0 : i32
    %c0_i32_1 = arith.constant 0 : i32
    return %c0_i32, %c0_i32_0 : i32, i32
  }
  func.func @transform_5(%arg0: i32) -> (i32, i32) {
    %c0_i32 = arith.constant 0 : i32
    %c0_i32_0 = arith.constant 0 : i32
    %c0_i32_1 = arith.constant 0 : i32
    return %c0_i32, %c0_i32_0 : i32, i32
  }
  func.func @transform_6(%arg0: i32) -> (i32, i32) {
    %c0_i32 = arith.constant 0 : i32
    %c0_i32_0 = arith.constant 0 : i32
    %c0_i32_1 = arith.constant 0 : i32
    return %c0_i32, %c0_i32_0 : i32, i32
  }
  func.func @transform_7(%arg0: i32) -> (i32, i32) {
    %c0_i32 = arith.constant 0 : i32
    %c0_i32_0 = arith.constant 0 : i32
    return %c0_i32, %arg0 : i32, i32
  }
}

</mosaic_0001>

<bundles_post_ra>
// kernel: tpu_custom_call.1
= control target key start
LH: loop header
LB: loop body
LE: loop exit
PB: predicated region body
PF: predicated region fallthrough
CT: control target
= control target key end

     0   :  { %s1321_s0 = inlined_call_operand.hbm [shape: f32[8,85], index: 0, kind: input, shape index: {}]   ;;  %s1322_s1 = inlined_call_operand.hbm [shape: bf16[85,128], index: 1, kind: input, shape index: {}]   ;;  %s1323_s2 = inlined_call_operand.vmem [shape: f32[1,128], index: 2, kind: input, shape index: {}]   ;;  %s1324_s3 = inlined_call_operand.hbm [shape: bf16[128,128], index: 3, kind: input, shape index: {}]   ;;  %s1325_s4 = inlined_call_operand.vmem [shape: f32[1,128], index: 4, kind: input, shape index: {}]   ;;  %s1326_s5 = inlined_call_operand.vmem [shape: bf16[1,128], index: 5, kind: input, shape index: {}]   ;;  %s1327_s6 = inlined_call_operand.<no memory space> [shape: f32[1,1], index: 6, kind: input, shape index: {}]   ;;  %s1328_s7 = inlined_call_operand.hbm [shape: f32[1,8], index: 7, kind: output, shape index: {}]  }
   0x1   :  { %v12_v0 = vstv %s1327_s6 }
   0x2   :  { %13 = vst [vmem:[#allocation2] sm:$0x1] %v12_v0 }
   0x3   :  { %14 = vsyncpa [#allocation4], 0 }
   0x4   :  { %15 = vsyncpa [#allocation7], 0 }
   0x5   :  { %16 = vsyncpa [#allocation5], 0 }
   0x6   :  { %21 = vsyncadd [#allocation4], 1920  ;;  %s1047_s26 = smov [#allocation6]   ;;  %s953_s30 = scalar_lea.hbm %s1322_s1, 704 }
   0x7   :  { %s34_s27 = sshll.u32 %s1047_s26, 4  ;;  %p954_p0 = scmp.ne.s32.totalorder %s1322_s1, %s953_s30  ;;  %s35_s27 = int_to_ptr.vmem [resolvable:$true] %s34_s27 }
   0x8   :  { %p957_p1 = scmp.lt.u32.totalorder %s953_s30, %s1322_s1 }
   0xa   :  { %p959_p2 = pnand %p957_p1, %p954_p0 }
   0xc   :  { %962 = shalt.err (!%p959_p2)
}
   0xd   :  { %s963_s6 = scalar_lea.vmem %s35_s27, 704  ;;  %p968_p4 = scmp.lt.s32.totalorder %s35_s27, %s35_s27 }
   0xe   :  { %p964_p3 = scmp.ne.s32.totalorder %s35_s27, %s963_s6  ;;  %p969_p5 = scmp.lt.s32.totalorder %s963_s6, %s963_s6 }
  0x10   :  { %p970_p6 = por %p969_p5, %p968_p4 }
  0x12   :  { %p971_p7 = pnand %p970_p6, %p964_p3 }
  0x14   :  { %974 = shalt.err (!%p971_p7)
}
  0x15   :  { %s1048_s12 = smov 64   ;;  %s1049_s13 = smov 4  }
  0x16   :  { %40 = dma.hbm_to_vmem [thread:$0]  %s1322_s1, 704, %s35_s27, [#allocation7], %s1048_s12, %s1048_s12, %s1049_s13  }
  0x17   :  { %s1050_s16 = smov [#allocation3]   ;;  %s975_s20 = scalar_lea.hbm %s1321_s0, 128 }
  0x18   :  { %s22_s17 = sshll.u32 %s1050_s16, 4  ;;  %p976_p8 = scmp.ne.s32.totalorder %s1321_s0, %s975_s20  ;;  %s23_s17 = int_to_ptr.vmem [resolvable:$true] %s22_s17 }
  0x19   :  { %p979_p9 = scmp.lt.u32.totalorder %s975_s20, %s1321_s0 }
  0x1b   :  { %p981_p10 = pnand %p979_p9, %p976_p8 }
  0x1d   :  { %984 = shalt.err (!%p981_p10)
}
  0x1e   :  { %s985_s25 = scalar_lea.vmem %s23_s17, 128  ;;  %s989_s1 = scalar_lea.vmem %s23_s17, 2048 }
  0x1f   :  { %p986_p11 = scmp.ne.s32.totalorder %s23_s17, %s985_s25  ;;  %p990_p12 = scmp.lt.s32.totalorder %s23_s17, %s23_s17 }
  0x20   :  { %p991_p13 = scmp.lt.s32.totalorder %s989_s1, %s985_s25 }
  0x22   :  { %p992_p0 = por %p991_p13, %p990_p12 }
  0x24   :  { %p993_p1 = pnand %p992_p0, %p986_p11 }
  0x26   :  { %996 = shalt.err (!%p993_p1)
}
  0x27   :  { %s1051_s26 = smov 128   ;;  %s1052_s27 = smov 8  }
  0x28   :  { %28 = dma.hbm_to_vmem [thread:$0]  %s1321_s0, 128, %s23_s17, [#allocation4], %s1051_s26, %s1051_s26, %s1052_s27  }
  0x29   :  { %s1053_s30 = smov [#allocation8]   ;;  %s997_s11 = scalar_lea.hbm %s1324_s3, 1024 }
  0x2a   :  { %s48_s8 = sshll.u32 %s1053_s30, 4  ;;  %p998_p2 = scmp.ne.s32.totalorder %s1324_s3, %s997_s11  ;;  %s49_s8 = int_to_ptr.vmem [resolvable:$true] %s48_s8 }
  0x2b   :  { %p1001_p3 = scmp.lt.u32.totalorder %s997_s11, %s1324_s3 }
  0x2d   :  { %p1003_p4 = pnand %p1001_p3, %p998_p2 }
  0x2f   :  { %1006 = shalt.err (!%p1003_p4)
}
  0x30   :  { %s1007_s18 = scalar_lea.vmem %s49_s8, 1024  ;;  %p1012_p6 = scmp.lt.s32.totalorder %s49_s8, %s49_s8 }
  0x31   :  { %p1008_p5 = scmp.ne.s32.totalorder %s49_s8, %s1007_s18  ;;  %p1013_p7 = scmp.lt.s32.totalorder %s1007_s18, %s1007_s18 }
  0x33   :  { %p1014_p8 = por %p1013_p7, %p1012_p6 }
  0x35   :  { %p1015_p9 = pnand %p1014_p8, %p1008_p5 }
  0x37   :  { %1018 = shalt.err (!%p1015_p9)
}
  0x38   :  { %54 = dma.hbm_to_vmem [thread:$0]  %s1324_s3, 1024, %s49_s8, [#allocation7], %s1048_s12, %s1048_s12, %s1049_s13  }
  0x39   :  { %1041 = dma.done.wait [#allocation4], 2048  }
  0x3a   :  { %1042 = vsyncadd [#allocation4], 4294965248 }
  0x3b   :  { %1043 = dma.done.wait [#allocation7], 1728  }
  0x3c   :  { %1044 = vsyncadd [#allocation7], 4294965568  ;;  %v875_v1 = vld [vmem:[#allocation6] sm:$0xff]   ;;  %v876_v2 = vld [vmem:[#allocation6 + $0x8] sm:$0xff]   ;;  %vm171_vm0 = vcmask 1041408   ;;  %vm146_vm1 = vcmask 695296  }
  0x3d   :  { %782 = vmatprep.subr.bf16.mxu1 %v875_v1  ;;  %v877_v3 = vld [vmem:[#allocation6 + $0x10] sm:$0xff]   ;;  %v71_v4 = vld [vmem:[#allocation3] sm:$0xff]  ;;  %v72_v5 = vld [vmem:[#allocation3 + $0x8] sm:$0xff]  ;;  %vm172_vm2 = vcmask 1042432   ;;  %v1054_v8 = vmov 65535   ;;  %s1058_s20 = smov [#allocation9]  }
  0x3e   :  { %783 = vmatpush3.bf16.msra.mxu1 %v875_v1  ;;  %v87_v6 = vpack.c.bf16 %v72_v5, %v71_v4  ;;  %v878_v7 = vld [vmem:[#allocation6 + $0x18] sm:$0xff]   ;;  %v173_v9 = vsel %vm171_vm0, 4294967295, %v1054_v8  ;;  %v880_v10 = vld [vmem:[#allocation6 + $0x28] ss:$0 sps:$4 sm:$0x77]   ;;  %v879_v11 = vld [vmem:[#allocation6 + $0x20] sm:$0xff]  }
  0x3f   :  { %784 = vmatprep.subr.bf16.mxu1 %v876_v2  ;;  %v174_v12 = vsel %vm172_vm2, %v173_v9, 0  ;;  %v73_v14 = vld [vmem:[#allocation3 + $0x10] sm:$0xff]  ;;  %v74_v15 = vld [vmem:[#allocation3 + $0x18] sm:$0xff]  ;;  %v75_v16 = vld [vmem:[#allocation3 + $0x20] sm:$0xff]  ;;  %s677_s21 = sshll.u32 %s1058_s20, 4  ;;  %s678_s21 = int_to_ptr.vmem [resolvable:$true] %s677_s21 }
  0x40   :  { %794 = vmatprep.mubr.msk.bf16.mxu1 %vm146_vm1, %v87_v6  ;;  %v176_v13 = vand.u32 %v880_v10, %v174_v12  ;;  %v76_v17 = vld [vmem:[#allocation3 + $0x28] sm:$0xff]  ;;  %v88_v19 = vpack.c.bf16 %v74_v15, %v73_v14  ;;  %v882_v21 = vld [vmem:[#allocation8 + $0x8] sm:$0xff]   ;;  %v79_v24 = vld [vmem:[#allocation3 + $0x40] sm:$0xff]  ;;  %s1019_s22 = scalar_lea.vmem %s678_s21, 16  ;;  %s1023_s23 = scalar_lea.vmem %s678_s21, 32 }
  0x41   :  { %v881_v18 = vld [vmem:[#allocation8] sm:$0xff]   ;;  %v89_v20 = vpack.c.bf16 %v76_v17, %v75_v16  ;;  %v78_v23 = vld [vmem:[#allocation3 + $0x38] sm:$0xff]  ;;  %v83_v30 = vld [vmem:[#allocation3 + $0x60] sm:$0xff]  ;;  %p1020_p10 = scmp.ne.s32.totalorder %s678_s21, %s1019_s22  ;;  %p1024_p11 = scmp.lt.s32.totalorder %s678_s21, %s678_s21 }
  0x42   :  { %785 = vmatpush3.bf16.msra.mxu1 %v876_v2  ;;  %v77_v22 = vld [vmem:[#allocation3 + $0x30] sm:$0xff]  ;;  %v80_v25 = vld [vmem:[#allocation3 + $0x48] sm:$0xff]  ;;  %v82_v29 = vld [vmem:[#allocation3 + $0x58] sm:$0xff]  ;;  %p1025_p12 = scmp.lt.s32.totalorder %s1023_s23, %s1019_s22 }
  0x43   :  { %786 = vmatprep.subr.bf16.mxu1 %v877_v3  ;;  %v90_v26 = vpack.c.bf16 %v78_v23, %v77_v22  ;;  %v91_v27 = vpack.c.bf16 %v80_v25, %v79_v24  ;;  %v81_v28 = vld [vmem:[#allocation3 + $0x50] sm:$0xff]  ;;  %v84_v31 = vld [vmem:[#allocation3 + $0x68] sm:$0xff]  ;;  %v86_v35 = vld [vmem:[#allocation3 + $0x78] sm:$0xff] }
  0x44   :  { %v92_v32 = vpack.c.bf16 %v82_v29, %v81_v28  ;;  %v93_v33 = vpack.c.bf16 %v84_v31, %v83_v30  ;;  %v85_v34 = vld [vmem:[#allocation3 + $0x70] sm:$0xff]  ;;  %v883_v37 = vld [vmem:[#allocation8 + $0x10] sm:$0xff]   ;;  %v884_v38 = vld [vmem:[#allocation8 + $0x18] sm:$0xff]   ;;  %p1026_p13 = por %p1025_p12, %p1024_p11 }
  0x45   :  { %v94_v36 = vpack.c.bf16 %v86_v35, %v85_v34  ;;  %v885_v39 = vld [vmem:[#allocation8 + $0x20] sm:$0xff]   ;;  %v886_v40 = vld [vmem:[#allocation8 + $0x28] sm:$0xff]   ;;  %v887_v41 = vld [vmem:[#allocation8 + $0x30] sm:$0xff]  }
  0x46   :  { %787 = vmatpush3.bf16.msra.mxu1 %v877_v3  ;;  %v888_v42 = vld [vmem:[#allocation8 + $0x38] sm:$0xff]   ;;  %v1155_v43 = vld [vmem:[%s1323_s2] ss:$0 sm:$0xff]  ;;  %p1027_p0 = pnand %p1026_p13, %p1020_p10 }
  0x47   :  { %788 = vmatprep.subr.bf16.mxu1 %v878_v7 }
  0x4a   :  { %789 = vmatpush3.bf16.msra.mxu1 %v878_v7 }
  0x4b   :  { %790 = vmatprep.subr.bf16.mxu1 %v879_v11 }
  0x4e   :  { %791 = vmatpush3.bf16.msra.mxu1 %v879_v11 }
  0x4f   :  { %792 = vmatprep.subr.bf16.mxu1 %v176_v13 }
  0x52   :  { %793 = vmatpush3.bf16.msra.mxu1 %v176_v13 }
  0x53   :  { %810 = vmatprep.subr.bf16.mxu1 %v881_v18 }
  0x55   :  { %795 = vmatmul.mubr.msk.bf16.vlgmr.msra.gmra.mrb[0].mxu1 %vm146_vm1, %v88_v19 }
  0x56   :  { %798 = vmatprep.mubr.msk.bf16.mxu1 %vm146_vm1, %v89_v20  ;;  %811 = vmatpush3.bf16.msra.mxu1 %v881_v18 }
  0x57   :  { %812 = vmatprep.subr.bf16.mxu1 %v882_v21 }
  0x5a   :  { %813 = vmatpush3.bf16.msra.mxu1 %v882_v21 }
  0x5b   :  { %814 = vmatprep.subr.bf16.mxu1 %v883_v37 }
  0x5d   :  { %799 = vmatmul.mubr.msk.bf16.gmra.mrb[4].mxu1 %vm146_vm1, %v90_v26 }
  0x5e   :  { %802 = vmatprep.mubr.msk.bf16.mxu1 %vm146_vm1, %v91_v27  ;;  %815 = vmatpush3.bf16.msra.mxu1 %v883_v37 }
  0x5f   :  { %816 = vmatprep.subr.bf16.mxu1 %v884_v38 }
  0x62   :  { %817 = vmatpush3.bf16.msra.mxu1 %v884_v38 }
  0x63   :  { %818 = vmatprep.subr.bf16.mxu1 %v885_v39 }
  0x65   :  { %803 = vmatmul.mubr.msk.bf16.gmra.mrb[8].mxu1 %vm146_vm1, %v92_v32 }
  0x66   :  { %806 = vmatprep.mubr.msk.bf16.mxu1 %vm146_vm1, %v93_v33  ;;  %819 = vmatpush3.bf16.msra.mxu1 %v885_v39 }
  0x67   :  { %820 = vmatprep.subr.bf16.mxu1 %v886_v40 }
  0x6a   :  { %821 = vmatpush3.bf16.msra.mxu1 %v886_v40 }
  0x6b   :  { %822 = vmatprep.subr.bf16.mxu1 %v887_v41 }
  0x6d   :  { %807 = vmatmul.mubr.msk.bf16.gmra.mrb[12].mxu1 %vm146_vm1, %v94_v36 }
  0x6e   :  { %823 = vmatpush3.bf16.msra.mxu1 %v887_v41 }
  0x6f   :  { %824 = vmatprep.subr.bf16.mxu1 %v888_v42 }
  0x72   :  { %825 = vmatpush3.bf16.msra.mxu1 %v888_v42 }
 0x128   :  { %v796_v44 = vpop.f32.mrb[0].mxu1 }
 0x129   :  { %v221_v45 = vadd.f32 %v796_v44, %v1155_v43  ;;  %v212_v46 = vpop.f32.mrb[1].mxu1 }
 0x12a   :  { %v213_v47 = vadd.f32 %v1155_v43, %v212_v46  ;;  %v797_v48 = vpop.f32.mrb[2].mxu1 }
 0x12b   :  { %v295_v49 = vmul.f32 1.442695, %v221_v45  ;;  %v224_v50 = vadd.f32 %v797_v48, %v1155_v43  ;;  %v215_v51 = vpop.f32.mrb[3].mxu1  ;;  %vm277_vm3 = vcmp.gt.f32.partialorder %v221_v45, 0.0 }
 0x12c   :  { %v291_v52 = vmul.f32 1.442695, %v213_v47  ;;  %v216_v53 = vadd.f32 %v1155_v43, %v215_v51  ;;  %vm275_vm5 = vcmp.gt.f32.partialorder %v213_v47, 0.0 }
 0x12d   :  { %889 = vpow2.f32 %v295_v49  ;;  %v297_v54 = vmul.f32 1.442695, %v224_v50  ;;  %vm278_vm4 = vcmp.gt.f32.partialorder %v224_v50, 0.0 }
 0x12e   :  { %891 = vpow2.f32 %v291_v52  ;;  %v293_v55 = vmul.f32 1.442695, %v216_v53  ;;  %vm276_vm6 = vcmp.gt.f32.partialorder %v216_v53, 0.0 }
 0x12f   :  { %893 = vpow2.f32 %v297_v54 }
 0x130   :  { %895 = vpow2.f32 %v293_v55  ;;  %v800_v56 = vpop.f32.mrb[4].mxu1 }
 0x131   :  { %v1162_v57 = vadd.f32 %v800_v56, %v1155_v43  ;;  %v228_v58 = vpop.f32.mrb[5].mxu1 }
 0x132   :  { %v1165_v59 = vadd.f32 %v1155_v43, %v228_v58  ;;  %v801_v60 = vpop.f32.mrb[6].mxu1 }
 0x133   :  { %v303_v61 = vmul.f32 1.442695, %v1162_v57  ;;  %v1169_v62 = vadd.f32 %v801_v60, %v1155_v43  ;;  %v231_v63 = vpop.f32.mrb[7].mxu1  ;;  %vm281_vm7 = vcmp.gt.f32.partialorder %v1162_v57, 0.0 }
 0x134   :  { %v299_v0 = vmul.f32 1.442695, %v1165_v59  ;;  %v1173_v1 = vadd.f32 %v1155_v43, %v231_v63  ;;  %vm279_vm8 = vcmp.gt.f32.partialorder %v1165_v59, 0.0 }
 0x135   :  { %897 = vpow2.f32 %v303_v61  ;;  %v305_v2 = vmul.f32 1.442695, %v1169_v62  ;;  %vm282_vm10 = vcmp.gt.f32.partialorder %v1169_v62, 0.0 }
 0x136   :  { %899 = vpow2.f32 %v299_v0  ;;  %v301_v3 = vmul.f32 1.442695, %v1173_v1  ;;  %vm280_vm9 = vcmp.gt.f32.partialorder %v1173_v1, 0.0 }
 0x137   :  { %v890_v4 = vpop.eup %889  ;;  %901 = vpow2.f32 %v305_v2 }
 0x138   :  { %v892_v5 = vpop.eup %891  ;;  %v704_v6 = vadd.f32 -1.0, %v890_v4  ;;  %903 = vpow2.f32 %v301_v3  ;;  %v804_v7 = vpop.f32.mrb[8].mxu1 }
 0x139   :  { %v894_v8 = vpop.eup %893  ;;  %v1178_v9 = vadd.f32 %v804_v7, %v1155_v43  ;;  %v244_v10 = vpop.f32.mrb[9].mxu1  ;;  %v702_v15 = vadd.f32 -1.0, %v892_v5 }
 0x13a   :  { %v896_v11 = vpop.eup %895  ;;  %v705_v12 = vadd.f32 -1.0, %v894_v8  ;;  %v1181_v13 = vadd.f32 %v1155_v43, %v244_v10  ;;  %v805_v14 = vpop.f32.mrb[10].mxu1  ;;  %v341_v20 = vsel %vm277_vm3, %v221_v45, %v704_v6  ;;  %vm1056_vm3 = vmmov 0  }
 0x13b   :  { %v703_v16 = vadd.f32 -1.0, %v896_v11  ;;  %v311_v17 = vmul.f32 1.442695, %v1178_v9  ;;  %v1185_v18 = vadd.f32 %v805_v14, %v1155_v43  ;;  %v247_v19 = vpop.f32.mrb[11].mxu1  ;;  %v339_v28 = vsel %vm275_vm5, %v213_v47, %v702_v15 }
 0x13c   :  { %v342_v21 = vsel %vm278_vm4, %v224_v50, %v705_v12  ;;  %v307_v22 = vmul.f32 1.442695, %v1181_v13  ;;  %v1189_v23 = vadd.f32 %v1155_v43, %v247_v19  ;;  %vm285_vm11 = vcmp.gt.f32.partialorder %v1178_v9, 0.0 }
 0x13d   :  { %v356_v24 = vpack.c.bf16 %v342_v21, %v341_v20  ;;  %905 = vpow2.f32 %v311_v17  ;;  %v313_v25 = vmul.f32 1.442695, %v1185_v18  ;;  %v340_v29 = vsel %vm276_vm6, %v216_v53, %v703_v16  ;;  %v620_v21 = vld [vmem:[#allocation2] sm:$0x1] }
 0x13e   :  { %907 = vpow2.f32 %v307_v22  ;;  %v309_v26 = vmul.f32 1.442695, %v1189_v23  ;;  %v355_v32 = vpack.c.bf16 %v340_v29, %v339_v28  ;;  %vm286_vm12 = vcmp.gt.f32.partialorder %v1185_v18, 0.0 }
 0x13f   :  { %v898_v27 = vpop.eup %897  ;;  %909 = vpow2.f32 %v313_v25  ;;  %vm283_vm13 = vcmp.gt.f32.partialorder %v1181_v13, 0.0  ;;  %vm284_vm14 = vcmp.gt.f32.partialorder %v1189_v23, 0.0  ;;  %v1055_v20 = vmov 0.0  }
 0x140   :  { %v900_v30 = vpop.eup %899  ;;  %911 = vpow2.f32 %v309_v26  ;;  %v808_v31 = vpop.f32.mrb[12].mxu1  ;;  %v708_v38 = vadd.f32 -1.0, %v898_v27  ;;  %826 = vmatprep.mubr.bf16.mxu1 %v355_v32  ;;  %842 = vmatprep.subr.bf16.mxu0 %v1055_v20  ;;  %v1057_v22 = vmov 0  }
 0x141   :  { %v902_v33 = vpop.eup %901  ;;  %v706_v34 = vadd.f32 -1.0, %v900_v30  ;;  %v1194_v35 = vadd.f32 %v808_v31, %v1155_v43  ;;  %v260_v36 = vpop.f32.mrb[13].mxu1  ;;  %827 = vmatmul.mubr.bf16.vlgmr.msra.gmra.mrb[16].mxu1 %v356_v24  ;;  %858 = vmatprep.mubr.msk.bf16.mxu0 %vm1056_vm3, %v1055_v20 }
 0x142   :  { %v904_v37 = vpop.eup %903  ;;  %v261_v39 = vadd.f32 %v1155_v43, %v260_v36  ;;  %v809_v40 = vpop.f32.mrb[14].mxu1  ;;  %v709_v41 = vadd.f32 -1.0, %v902_v33  ;;  %v345_v55 = vsel %vm281_vm7, %v1162_v57, %v708_v38  ;;  %874 = vset.pattern.permute.xlu0 %v1057_v22 }
 0x143   :  { %v707_v42 = vadd.f32 -1.0, %v904_v37  ;;  %v319_v44 = vmul.f32 1.442695, %v1194_v35  ;;  %v272_v45 = vadd.f32 %v809_v40, %v1155_v43  ;;  %v263_v46 = vpop.f32.mrb[15].mxu1  ;;  %v343_v50 = vsel %vm279_vm8, %v1165_v59, %v706_v34  ;;  %623 = vperm.xlu0 %874, %v620_v21  }
 0x144   :  { %v315_v47 = vmul.f32 1.442695, %v261_v39  ;;  %v264_v48 = vadd.f32 %v1155_v43, %v263_v46  ;;  %v346_v43 = vsel %vm282_vm10, %v1169_v62, %v709_v41  ;;  %vm289_vm15 = vcmp.gt.f32.partialorder %v1194_v35, 0.0 }
 0x145   :  { %913 = vpow2.f32 %v319_v44  ;;  %v321_v49 = vmul.f32 1.442695, %v272_v45  ;;  %v344_v51 = vsel %vm280_vm9, %v1173_v1, %v707_v42  ;;  %v358_v59 = vpack.c.bf16 %v346_v43, %v345_v55 }
 0x146   :  { %915 = vpow2.f32 %v315_v47  ;;  %v317_v52 = vmul.f32 1.442695, %v264_v48  ;;  %v357_v53 = vpack.c.bf16 %v344_v51, %v343_v50  ;;  %vm287_vm0 = vcmp.gt.f32.partialorder %v261_v39, 0.0 }
 0x147   :  { %v906_v54 = vpop.eup %905  ;;  %917 = vpow2.f32 %v321_v49  ;;  %vm290_vm1 = vcmp.gt.f32.partialorder %v272_v45, 0.0  ;;  %vm288_vm2 = vcmp.gt.f32.partialorder %v264_v48, 0.0 }
 0x148   :  { %v908_v56 = vpop.eup %907  ;;  %v712_v58 = vadd.f32 -1.0, %v906_v54  ;;  %919 = vpow2.f32 %v317_v52  ;;  %830 = vmatprep.mubr.bf16.mxu1 %v357_v53 }
 0x149   :  { %v910_v60 = vpop.eup %909  ;;  %v710_v61 = vadd.f32 -1.0, %v908_v56  ;;  %831 = vmatmul.mubr.bf16.gmra.mrb[20].mxu1 %v358_v59 }
 0x14a   :  { %v912_v63 = vpop.eup %911  ;;  %v713_v0 = vadd.f32 -1.0, %v910_v60  ;;  %v349_v57 = vsel %vm285_vm11, %v1178_v9, %v712_v58 }
 0x14b   :  { %v711_v62 = vadd.f32 -1.0, %v912_v63  ;;  %v347_v2 = vsel %vm283_vm13, %v1181_v13, %v710_v61 }
 0x14c   :  { %v350_v1 = vsel %vm286_vm12, %v1185_v18, %v713_v0 }
 0x14d   :  { %v348_v3 = vsel %vm284_vm14, %v1189_v23, %v711_v62  ;;  %v360_v4 = vpack.c.bf16 %v350_v1, %v349_v57  ;;  %v1227_v23 = vld [vmem:[%s1325_s4] ss:$0 sm:$0xff] }
 0x14e   :  { %v359_v5 = vpack.c.bf16 %v348_v3, %v347_v2 }
 0x14f   :  { %v914_v6 = vpop.eup %913 }
 0x150   :  { %v916_v7 = vpop.eup %915  ;;  %v716_v8 = vadd.f32 -1.0, %v914_v6  ;;  %834 = vmatprep.mubr.bf16.mxu1 %v359_v5 }
 0x151   :  { %v918_v10 = vpop.eup %917  ;;  %v714_v11 = vadd.f32 -1.0, %v916_v7  ;;  %835 = vmatmul.mubr.bf16.gmra.mrb[24].mxu1 %v360_v4 }
 0x152   :  { %v920_v9 = vpop.eup %919  ;;  %v717_v12 = vadd.f32 -1.0, %v918_v10  ;;  %v353_v14 = vsel %vm289_vm15, %v1194_v35, %v716_v8 }
 0x153   :  { %v715_v13 = vadd.f32 -1.0, %v920_v9  ;;  %v351_v15 = vsel %vm287_vm0, %v261_v39, %v714_v11 }
 0x154   :  { %v354_v16 = vsel %vm290_vm1, %v272_v45, %v717_v12 }
 0x155   :  { %v352_v17 = vsel %vm288_vm2, %v264_v48, %v715_v13  ;;  %v362_v18 = vpack.c.bf16 %v354_v16, %v353_v14 }
 0x156   :  { %v361_v19 = vpack.c.bf16 %v352_v17, %v351_v15 }
 0x158   :  { %838 = vmatprep.mubr.bf16.mxu1 %v361_v19 }
 0x159   :  { %839 = vmatmul.mubr.bf16.gmra.mrb[28].mxu1 %v362_v18 }
 0x214   :  { %v828_v24 = vpop.f32.mrb[16].mxu1 }
 0x215   :  { %v1230_v25 = vadd.f32 %v828_v24, %v1227_v23  ;;  %v468_v26 = vpop.f32.mrb[17].mxu1 }
 0x216   :  { %v469_v27 = vadd.f32 %v1227_v23, %v468_v26  ;;  %v829_v28 = vpop.f32.mrb[18].mxu1 }
 0x217   :  { %v551_v29 = vmul.f32 1.442695, %v1230_v25  ;;  %v480_v30 = vadd.f32 %v829_v28, %v1227_v23  ;;  %v471_v31 = vpop.f32.mrb[19].mxu1  ;;  %vm533_vm4 = vcmp.gt.f32.partialorder %v1230_v25, 0.0 }
 0x218   :  { %v547_v32 = vmul.f32 1.442695, %v469_v27  ;;  %v472_v33 = vadd.f32 %v1227_v23, %v471_v31  ;;  %vm531_vm5 = vcmp.gt.f32.partialorder %v469_v27, 0.0 }
 0x219   :  { %921 = vpow2.f32 %v551_v29  ;;  %v553_v34 = vmul.f32 1.442695, %v480_v30  ;;  %vm534_vm7 = vcmp.gt.f32.partialorder %v480_v30, 0.0 }
 0x21a   :  { %923 = vpow2.f32 %v547_v32  ;;  %v549_v35 = vmul.f32 1.442695, %v472_v33  ;;  %vm532_vm6 = vcmp.gt.f32.partialorder %v472_v33, 0.0 }
 0x21b   :  { %925 = vpow2.f32 %v553_v34 }
 0x21c   :  { %927 = vpow2.f32 %v549_v35  ;;  %v832_v36 = vpop.f32.mrb[20].mxu1 }
 0x21d   :  { %v1237_v37 = vadd.f32 %v832_v36, %v1227_v23  ;;  %v484_v38 = vpop.f32.mrb[21].mxu1 }
 0x21e   :  { %v1240_v39 = vadd.f32 %v1227_v23, %v484_v38  ;;  %v833_v40 = vpop.f32.mrb[22].mxu1 }
 0x21f   :  { %v559_v41 = vmul.f32 1.442695, %v1237_v37  ;;  %v1244_v42 = vadd.f32 %v833_v40, %v1227_v23  ;;  %v487_v44 = vpop.f32.mrb[23].mxu1  ;;  %vm537_vm8 = vcmp.gt.f32.partialorder %v1237_v37, 0.0 }
 0x220   :  { %v555_v45 = vmul.f32 1.442695, %v1240_v39  ;;  %v1248_v46 = vadd.f32 %v1227_v23, %v487_v44  ;;  %vm535_vm9 = vcmp.gt.f32.partialorder %v1240_v39, 0.0 }
 0x221   :  { %929 = vpow2.f32 %v559_v41  ;;  %v561_v47 = vmul.f32 1.442695, %v1244_v42  ;;  %vm538_vm11 = vcmp.gt.f32.partialorder %v1244_v42, 0.0 }
 0x222   :  { %931 = vpow2.f32 %v555_v45  ;;  %v557_v48 = vmul.f32 1.442695, %v1248_v46  ;;  %vm536_vm10 = vcmp.gt.f32.partialorder %v1248_v46, 0.0 }
 0x223   :  { %v922_v49 = vpop.eup %921  ;;  %933 = vpow2.f32 %v561_v47 }
 0x224   :  { %v924_v50 = vpop.eup %923  ;;  %935 = vpow2.f32 %v557_v48  ;;  %v836_v51 = vpop.f32.mrb[24].mxu1  ;;  %v729_v56 = vadd.f32 -1.0, %v922_v49 }
 0x225   :  { %v926_v52 = vpop.eup %925  ;;  %v1253_v53 = vadd.f32 %v836_v51, %v1227_v23  ;;  %v500_v54 = vpop.f32.mrb[25].mxu1  ;;  %v727_v55 = vadd.f32 -1.0, %v924_v50 }
 0x226   :  { %v928_v43 = vpop.eup %927  ;;  %v1257_v58 = vadd.f32 %v1227_v23, %v500_v54  ;;  %v837_v59 = vpop.f32.mrb[26].mxu1  ;;  %v730_v60 = vadd.f32 -1.0, %v926_v52  ;;  %v597_v8 = vsel %vm533_vm4, %v1230_v25, %v729_v56 }
 0x227   :  { %v567_v61 = vmul.f32 1.442695, %v1253_v53  ;;  %v1261_v63 = vadd.f32 %v837_v59, %v1227_v23  ;;  %v503_v0 = vpop.f32.mrb[27].mxu1  ;;  %v728_v57 = vadd.f32 -1.0, %v928_v43  ;;  %v595_v3 = vsel %vm531_vm5, %v469_v27, %v727_v55 }
 0x228   :  { %v563_v62 = vmul.f32 1.442695, %v1257_v58  ;;  %v1265_v1 = vadd.f32 %v1227_v23, %v503_v0  ;;  %v598_v10 = vsel %vm534_vm7, %v480_v30, %v730_v60  ;;  %vm541_vm12 = vcmp.gt.f32.partialorder %v1253_v53, 0.0 }
 0x229   :  { %937 = vpow2.f32 %v567_v61  ;;  %v569_v2 = vmul.f32 1.442695, %v1261_v63  ;;  %v596_v4 = vsel %vm532_vm6, %v472_v33, %v728_v57  ;;  %v613_v12 = vpack.c.bf16 %v598_v10, %v597_v8 }
 0x22a   :  { %939 = vpow2.f32 %v563_v62  ;;  %v565_v5 = vmul.f32 1.442695, %v1265_v1  ;;  %v612_v6 = vpack.c.bf16 %v596_v4, %v595_v3  ;;  %vm542_vm13 = vcmp.gt.f32.partialorder %v1261_v63, 0.0 }
 0x22b   :  { %v930_v7 = vpop.eup %929  ;;  %941 = vpow2.f32 %v569_v2  ;;  %vm539_vm14 = vcmp.gt.f32.partialorder %v1257_v58, 0.0  ;;  %vm540_vm15 = vcmp.gt.f32.partialorder %v1265_v1, 0.0  ;;  %v626_v2 = vlaneseq }
 0x22c   :  { %v932_v11 = vpop.eup %931  ;;  %943 = vpow2.f32 %v565_v5  ;;  %v840_v9 = vpop.f32.mrb[28].mxu1  ;;  %843 = vmatpush3.bf16.xpose.msra.mxu0 %v612_v6  ;;  %v733_v18 = vadd.f32 -1.0, %v930_v7 }
 0x22d   :  { %v934_v14 = vpop.eup %933  ;;  %v731_v13 = vadd.f32 -1.0, %v932_v11  ;;  %v1273_v15 = vadd.f32 %v840_v9, %v1227_v23  ;;  %v516_v16 = vpop.f32.mrb[29].mxu1  ;;  %844 = vmatprep.subr.bf16.mxu0 %v1055_v20  ;;  %v627_v3 = vshrl.u32 %v626_v2, 7 }
 0x22e   :  { %v936_v17 = vpop.eup %935  ;;  %v517_v19 = vadd.f32 %v1227_v23, %v516_v16  ;;  %v841_v21 = vpop.f32.mrb[30].mxu1  ;;  %v734_v22 = vadd.f32 -1.0, %v934_v14  ;;  %v601_v36 = vsel %vm537_vm8, %v1237_v37, %v733_v18 }
 0x22f   :  { %v732_v24 = vadd.f32 -1.0, %v936_v17  ;;  %v575_v25 = vmul.f32 1.442695, %v1273_v15  ;;  %v528_v26 = vadd.f32 %v841_v21, %v1227_v23  ;;  %v519_v27 = vpop.f32.mrb[31].mxu1  ;;  %v599_v31 = vsel %vm535_vm9, %v1240_v39, %v731_v13  ;;  %v624_v5 = vpop.permute.xlu0 %623 }
 0x230   :  { %v571_v28 = vmul.f32 1.442695, %v517_v19  ;;  %v520_v29 = vadd.f32 %v1227_v23, %v519_v27  ;;  %v602_v38 = vsel %vm538_vm11, %v1244_v42, %v734_v22  ;;  %vm545_vm0 = vcmp.gt.f32.partialorder %v1273_v15, 0.0 }
 0x231   :  { %945 = vpow2.f32 %v575_v25  ;;  %v577_v30 = vmul.f32 1.442695, %v528_v26  ;;  %v600_v32 = vsel %vm536_vm10, %v1248_v46, %v732_v24  ;;  %v615_v39 = vpack.c.bf16 %v602_v38, %v601_v36 }
 0x232   :  { %947 = vpow2.f32 %v571_v28  ;;  %v573_v33 = vmul.f32 1.442695, %v520_v29  ;;  %v614_v34 = vpack.c.bf16 %v600_v32, %v599_v31  ;;  %vm546_vm1 = vcmp.gt.f32.partialorder %v528_v26, 0.0 }
 0x233   :  { %v938_v35 = vpop.eup %937  ;;  %949 = vpow2.f32 %v577_v30  ;;  %vm543_vm2 = vcmp.gt.f32.partialorder %v517_v19, 0.0  ;;  %vm544_vm3 = vcmp.gt.f32.partialorder %v520_v29, 0.0  ;;  %v628_v4 = vsub.s32 0, %v627_v3 }
 0x234   :  { %v940_v23 = vpop.eup %939  ;;  %v737_v40 = vadd.f32 -1.0, %v938_v35  ;;  %951 = vpow2.f32 %v573_v33  ;;  %845 = vmatpush3.bf16.xpose.msra.mxu0 %v613_v12 }
 0x235   :  { %v942_v41 = vpop.eup %941  ;;  %v735_v44 = vadd.f32 -1.0, %v940_v23  ;;  %846 = vmatprep.subr.bf16.mxu0 %v1055_v20  ;;  %v629_v6 = vrot.slane %v624_v5, %v628_v4 }
 0x236   :  { %v944_v45 = vpop.eup %943  ;;  %v738_v46 = vadd.f32 -1.0, %v942_v41  ;;  %v605_v37 = vsel %vm541_vm12, %v1253_v53, %v737_v40 }
 0x237   :  { %v736_v47 = vadd.f32 -1.0, %v944_v45  ;;  %v603_v48 = vsel %vm539_vm14, %v1257_v58, %v735_v44 }
 0x238   :  { %v606_v42 = vsel %vm542_vm13, %v1261_v63, %v738_v46 }
 0x239   :  { %v604_v49 = vsel %vm540_vm15, %v1265_v1, %v736_v47  ;;  %v617_v50 = vpack.c.bf16 %v606_v42, %v605_v37  ;;  %v611_v1 = vld [vmem:[%s1326_s5] sm:$0x1] }
 0x23a   :  { %v616_v51 = vpack.c.bf16 %v604_v49, %v603_v48 }
 0x23b   :  { %v946_v52 = vpop.eup %945 }
 0x23c   :  { %v948_v54 = vpop.eup %947  ;;  %v741_v55 = vadd.f32 -1.0, %v946_v52  ;;  %847 = vmatpush3.bf16.xpose.msra.mxu0 %v614_v34 }
 0x23d   :  { %v950_v43 = vpop.eup %949  ;;  %v739_v56 = vadd.f32 -1.0, %v948_v54  ;;  %848 = vmatprep.subr.bf16.mxu0 %v1055_v20 }
 0x23e   :  { %v952_v59 = vpop.eup %951  ;;  %v742_v60 = vadd.f32 -1.0, %v950_v43  ;;  %v609_v58 = vsel %vm545_vm0, %v1273_v15, %v741_v55 }
 0x23f   :  { %v740_v53 = vadd.f32 -1.0, %v952_v59  ;;  %v607_v63 = vsel %vm543_vm2, %v517_v19, %v739_v56 }
 0x240   :  { %v610_v61 = vsel %vm546_vm1, %v528_v26, %v742_v60 }
 0x241   :  { %v608_v0 = vsel %vm544_vm3, %v520_v29, %v740_v53  ;;  %v619_v57 = vpack.c.bf16 %v610_v61, %v609_v58 }
 0x242   :  { %v618_v62 = vpack.c.bf16 %v608_v0, %v607_v63 }
 0x244   :  { %849 = vmatpush3.bf16.xpose.msra.mxu0 %v615_v39 }
 0x245   :  { %850 = vmatprep.subr.bf16.mxu0 %v1055_v20 }
 0x24c   :  { %851 = vmatpush3.bf16.xpose.msra.mxu0 %v616_v51 }
 0x24d   :  { %852 = vmatprep.subr.bf16.mxu0 %v1055_v20 }
 0x254   :  { %853 = vmatpush3.bf16.xpose.msra.mxu0 %v617_v50 }
 0x255   :  { %854 = vmatprep.subr.bf16.mxu0 %v1055_v20 }
 0x25c   :  { %855 = vmatpush3.bf16.xpose.msra.mxu0 %v618_v62 }
 0x25d   :  { %856 = vmatprep.subr.bf16.mxu0 %v1055_v20 }
 0x264   :  { %857 = vmatpush3.bf16.xpose.msra.mxu0 %v619_v57 }
 0x26b   :  { %859 = vmatmul.mubr.bf16.vlgmr.msra.gmra.mrb[0].mxu0 %v611_v1 }
 0x33e   :  { %v664_v7 = vpop.f32.mrb[0].mxu0 }
 0x33f   :  { %v665_v8 = vadd.f32 %v664_v7, %v629_v6  ;;  %v860_v10 = vpop.f32.mrb[1].mxu0 }
 0x340   :  { %v667_v11 = vpop.f32.mrb[2].mxu0 }
 0x341   :  { %670 = vst [vmem:[#allocation9] sm:$0x1] %v665_v8  ;;  %v861_v20 = vpop.f32.mrb[3].mxu0 }
 0x342   :  { %1030 = shalt.err (!%p1027_p0)
}
 0x343   :  { %s1031_s25 = scalar_lea.hbm %s1328_s7, 16 }
 0x344   :  { %p1032_p1 = scmp.ne.s32.totalorder %s1328_s7, %s1031_s25  ;;  %p1035_p2 = scmp.lt.u32.totalorder %s1031_s25, %s1328_s7 }
 0x346   :  { %p1037_p3 = pnand %p1035_p2, %p1032_p1 }
 0x348   :  { %1040 = shalt.err (!%p1037_p3)
}
 0x349   :  { %680 = dma.vmem_to_hbm [thread:$0]  %s678_s21, 16, %s1328_s7, [#allocation5]  }
 0x34a   :  { %1045 = dma.done.wait [#allocation5], 16  }
 0x34b   :  { %1046 = vsyncadd [#allocation5], 4294967280 }
 0x34c   :  { %684 = vsyncpa [#allocation4], 1 }
 0x34d   :  { %685 = vsyncpa [#allocation7], 1 }
 0x34e   :  { %686 = vsyncpa [#allocation5], 1 }

</bundles_post_ra>
